<compile_context>
chip_gen: v7x
topology: tpu7x:2x2x1
jax: 0.10.0
libtpu: 0.0.40
codegen_flags: <defaults>
</compile_context>

<pallas_src>
import functools

import jax
import jax.numpy as jnp
from jax import lax
from jax.experimental import pallas as pl
from jax.experimental.pallas import tpu as pltpu

EPS = 1e-5
NEG_SLOPE = 0.2
_MIB = 1024 * 1024


def _round_up(x, m):
    return ((x + m - 1) // m) * m


def _vmem_limit_bytes():
    """Scoped-VMEM budget per generation: ~96 MiB on 128-MiB v5e/v6e, 48 MiB on 64-MiB v7x."""
    try:
        cap = int(pltpu.get_tpu_info().vmem_capacity_bytes)
    except Exception:
        cap = 64 * _MIB  # conservative fallback: assume v7x-sized VMEM
    return max(32 * _MIB, min(96 * _MIB, (cap * 3) // 4))


def _pick_tile_m(m, k, n_pad, vmem_limit, out_itemsize):
    """Largest M tile (multiple of 8, <= 2048) whose pipelined working set fits the budget."""
    budget = int(vmem_limit * 0.7)
    weight_bytes = k * n_pad * 2                                 # bf16 weights, single-buffered
    per_row_p1 = 2 * (k * 2) + 2 * (n_pad * 2)                   # dbl-buf bf16 patches + bf16 y
    per_row_p2 = 2 * (n_pad * 2) + 2 * (n_pad * out_itemsize)    # pass-2 y in + out
    per_row = max(per_row_p1, per_row_p2, 1)
    tm = (budget - weight_bytes) // per_row
    tm = min(tm, 2048, _round_up(m, 8))
    return int(max(8, (tm // 8) * 8))


# ---------------------------------------------------------------------------
# Pass 1: tiled GEMM (bf16 MXU, f32 accumulate) + per-tile per-channel stats.
# ---------------------------------------------------------------------------
def gemm_stats_kernel(p_ref, w_ref, y_ref, sum_ref, sq_ref):
    # [TM, K] @ [K, Npad] -> [TM, Npad], f32 accumulation on the MXU.
    y = jnp.dot(p_ref[...], w_ref[...], preferred_element_type=jnp.float32)
    y_ref[...] = y.astype(y_ref.dtype)

    # Per-tile partial statistics, computed as MXU row-sums (ones[8,tm] @ y):
    # the 8-row ones LHS keeps the matmul sublane-aligned; all 8 output rows are
    # identical copies of the per-channel column sum (wrapper keeps row 0).
    # Zero-padded M rows contribute nothing.
    ones = jnp.ones((8, y.shape[0]), dtype=jnp.float32)
    sum_ref[...] = jnp.dot(ones, y, preferred_element_type=jnp.float32)
    sq_ref[...] = jnp.dot(ones, y * y, preferred_element_type=jnp.float32)


# ---------------------------------------------------------------------------
# Pass 2: normalize + affine folded into one FMA, then LeakyReLU(0.2).
# ---------------------------------------------------------------------------
def bn_lrelu_kernel(y_ref, a_ref, b_ref, o_ref):
    z = y_ref[...].astype(jnp.float32) * a_ref[...] + b_ref[...]
    o_ref[...] = jnp.maximum(z, NEG_SLOPE * z).astype(o_ref.dtype)


def extract_patches(x, kh, kw, stride, padding):
    """im2col via Kh*Kw static strided slices (no gather).

    x: [B, Cin, H, W] -> [B*Ho*Wo, Cin*Kh*Kw], K ordered (Cin, Kh, Kw), Kw fastest
    (matches weight.reshape(Cout, Cin*Kh*Kw)).
    """
    b, cin, h, w = x.shape
    ho = (h + 2 * padding - kh) // stride + 1
    wo = (w + 2 * padding - kw) // stride + 1
    xp = jnp.pad(x, ((0, 0), (0, 0), (padding, padding), (padding, padding)))
    slabs = []
    for dh in range(kh):
        for dw in range(kw):
            slabs.append(lax.slice(
                xp,
                (0, 0, dh, dw),
                (b, cin, dh + (ho - 1) * stride + 1, dw + (wo - 1) * stride + 1),
                (1, 1, stride, stride)))                      # [B, Cin, Ho, Wo]
    p = jnp.stack(slabs, axis=0).reshape(kh, kw, b, cin, ho, wo)
    p = jnp.transpose(p, (2, 4, 5, 3, 0, 1))                  # [B, Ho, Wo, Cin, Kh, Kw]
    return p.reshape(b * ho * wo, cin * kh * kw), (b, ho, wo)


@functools.partial(jax.jit, static_argnames=("stride", "padding", "tile_m",
                                             "out_dtype", "channels_last"))
def conv_block(x, weight, gamma, beta, *, stride=2, padding=1, tile_m=None,
               out_dtype=None, channels_last=False):
    """x: [B, Cin, H, W] NCHW, weight: [Cout, Cin, Kh, Kw] (PyTorch layout).

    Default output matches the nn.Module: x.dtype (f32) NCHW [B, Cout, Ho, Wo].
    For stacked discriminator layers pass out_dtype=jnp.bfloat16, channels_last=True
    to halve the pass-2 HBM writeback and skip the wrapper NCHW transpose.
    """
    cout, cin, kh, kw = weight.shape
    out_dt = jnp.dtype(out_dtype) if out_dtype is not None else jnp.dtype(x.dtype)

    # Build im2col patches directly in bf16 (halves duplicated-patch HBM bytes).
    patches, (batch, ho, wo) = extract_patches(
        x.astype(jnp.bfloat16), kh, kw, stride, padding)
    m, k = patches.shape

    # Lane-dense channel dim. (Cout <= 128 half-fills the 256-wide v6e/v7x MXU;
    # those shallow layers are memory-bound, so we accept it per review.)
    n_pad = _round_up(cout, 128)

    vmem_limit = _vmem_limit_bytes()
    if tile_m is None:
        tm = _pick_tile_m(m, k, n_pad, vmem_limit, out_dt.itemsize)
    else:
        tm = max(8, (min(int(tile_m), _round_up(m, 8)) // 8) * 8)
    m_pad = _round_up(m, tm)
    num_tiles = m_pad // tm

    patches_p = jnp.pad(patches, ((0, m_pad - m), (0, 0)))            # [Mp, K] bf16
    w2d = weight.reshape(cout, cin * kh * kw).T.astype(jnp.bfloat16)  # [K, Cout]
    w2d = jnp.pad(w2d, ((0, 0), (0, n_pad - cout)))                   # [K, Npad]
    # Padded-channel invariant: gamma/beta are zero-padded, so the BN fold gives
    # a = b = 0 for padded columns -> they are exactly 0 after pass 2 and sliced off.
    gamma_p = jnp.pad(gamma.astype(jnp.float32), (0, n_pad - cout))
    beta_p = jnp.pad(beta.astype(jnp.float32), (0, n_pad - cout))

    # ---- Pass 1: conv-GEMM + per-tile batch statistics (megacore-parallel) ----
    y, s1, s2 = pl.pallas_call(
        gemm_stats_kernel,
        out_shape=(
            jax.ShapeDtypeStruct((m_pad, n_pad), jnp.bfloat16),        # pre-BN activations
            jax.ShapeDtypeStruct((num_tiles * 8, n_pad), jnp.float32),  # per-tile sum(y)
            jax.ShapeDtypeStruct((num_tiles * 8, n_pad), jnp.float32),  # per-tile sum(y^2)
        ),
        grid_spec=pltpu.PrefetchScalarGridSpec(
            num_scalar_prefetch=0,
            grid=(num_tiles,),
            in_specs=[
                pl.BlockSpec((tm, k), lambda i: (i, 0)),            # patches tile
                pl.BlockSpec((k, n_pad), lambda i: (0, 0),          # weights: resident,
                             pipeline_mode=pl.Buffered(1)),         # single-buffered
            ],
            out_specs=[
                pl.BlockSpec((tm, n_pad), lambda i: (i, 0)),        # y tile
                pl.BlockSpec((8, n_pad), lambda i: (i, 0)),         # per-tile sum rows
                pl.BlockSpec((8, n_pad), lambda i: (i, 0)),         # per-tile sumsq rows
            ],
        ),
        compiler_params=pltpu.CompilerParams(
            dimension_semantics=("parallel",),   # no cross-tile carry -> megacore OK
            vmem_limit_bytes=vmem_limit),
    )(patches_p, w2d)

    # ---- Fold BN (biased batch variance, eps=1e-5) into a single FMA ----------
    # Stats use the f32 MXU accumulation; var = E[y^2]-E[y]^2 in f32 is
    # cancellation-prone only when |mean| >> std (not the case for conv outputs
    # with zero-mean weights).  Pass 2 normalizes the bf16-rounded y, so the
    # normalized mean/var are ~0/1 rather than exactly 0/1 - acceptable for GAN
    # training and the source of the 5e-2 test tolerance below.
    s1 = s1.reshape(num_tiles, 8, n_pad)[:, 0, :]   # all 8 rows identical -> keep row 0
    s2 = s2.reshape(num_tiles, 8, n_pad)[:, 0, :]
    mean = jnp.sum(s1, axis=0) / float(m)
    var = jnp.maximum(jnp.sum(s2, axis=0) / float(m) - mean * mean, 0.0)
    a_vec = gamma_p * lax.rsqrt(var + EPS)
    b_vec = beta_p - mean * a_vec
    a2 = a_vec.reshape(1, n_pad)
    b2 = b_vec.reshape(1, n_pad)

    # ---- Pass 2: normalize + scale/shift + LeakyReLU ---------------------------
    out = pl.pallas_call(
        bn_lrelu_kernel,
        out_shape=jax.ShapeDtypeStruct((m_pad, n_pad), out_dt),
        grid_spec=pltpu.PrefetchScalarGridSpec(
            num_scalar_prefetch=0,
            grid=(num_tiles,),
            in_specs=[
                pl.BlockSpec((tm, n_pad), lambda i: (i, 0)),
                pl.BlockSpec((1, n_pad), lambda i: (0, 0)),
                pl.BlockSpec((1, n_pad), lambda i: (0, 0)),
            ],
            out_specs=pl.BlockSpec((tm, n_pad), lambda i: (i, 0)),
        ),
        compiler_params=pltpu.CompilerParams(
            dimension_semantics=("parallel",),
            vmem_limit_bytes=vmem_limit),
    )(y, a2, b2)

    # [Mp, Npad] -> valid [M, Cout] -> [B, Ho, Wo, Cout]
    out = out[:m, :cout].reshape(batch, ho, wo, cout)
    if channels_last:
        return out                                  # NHWC, no transpose
    return jnp.transpose(out, (0, 3, 1, 2))         # NCHW (module interface)


def conv_block_reference(x, weight, gamma, beta, *, stride=2, padding=1):
    """Pure-JAX f32 reference for the same forward pass (sanity check only)."""
    y = lax.conv_general_dilated(
        x.astype(jnp.float32), weight.astype(jnp.float32),
        window_strides=(stride, stride),
        padding=((padding, padding), (padding, padding)),
        dimension_numbers=("NCHW", "OIHW", "NCHW"))
    mean = jnp.mean(y, axis=(0, 2, 3), keepdims=True)
    var = jnp.mean((y - mean) ** 2, axis=(0, 2, 3), keepdims=True)
    z = (y - mean) * lax.rsqrt(var + EPS)
    z = z * gamma.reshape(1, -1, 1, 1) + beta.reshape(1, -1, 1, 1)
    return jnp.where(z > 0, z, NEG_SLOPE * z)


if __name__ == "__main__":
    key = jax.random.PRNGKey(0)
    k_x, k_w = jax.random.split(key)

    B, Cin, H, W = 2, 4, 16, 16
    Cout, Kh, Kw = 8, 4, 4

    x = jax.random.normal(k_x, (B, Cin, H, W), dtype=jnp.float32)
    # Deterministic synthetic params (Conv2d has bias=False).
    weight = 0.05 * jax.random.normal(k_w, (Cout, Cin, Kh, Kw), dtype=jnp.float32)
    gamma = jnp.linspace(0.8, 1.2, Cout, dtype=jnp.float32)
    beta = jnp.linspace(-0.1, 0.1, Cout, dtype=jnp.float32)

    ref = conv_block_reference(x, weight, gamma, beta)

    # tile_m=48 at this small size exercises multi-tile per-tile stats plus M
    # zero-padding (M = 128 -> 3 tiles of 48).  At real DCGAN sizes leave
    # tile_m=None so it is sized against the detected VMEM per generation.
    out = conv_block(x, weight, gamma, beta, tile_m=48)
    jax.block_until_ready(out)
    assert out.shape == (B, Cout, H // 2, W // 2), out.shape
    # bf16 MXU inputs + bf16 pre-BN intermediate vs a pure-f32 reference; BN
    # normalization amplifies the rounding by ~1/std, hence the 5e-2 tolerance.
    err = float(jnp.max(jnp.abs(out - ref)))
    assert err < 5e-2, f"NCHW f32 mismatch vs reference: max abs err {err}"

    # Fast path for stacked discriminator layers: bf16 channels-last output
    # (halved writeback, no NCHW transpose).  Extra bf16 output rounding -> 7e-2.
    out_cl = conv_block(x, weight, gamma, beta, tile_m=48,
                        out_dtype=jnp.bfloat16, channels_last=True)
    jax.block_until_ready(out_cl)
    assert out_cl.shape == (B, H // 2, W // 2, Cout), out_cl.shape
    err_cl = float(jnp.max(jnp.abs(
        jnp.transpose(out_cl.astype(jnp.float32), (0, 3, 1, 2)) - ref)))
    assert err_cl < 7e-2, f"NHWC bf16 mismatch vs reference: max abs err {err_cl}"

    print("KERNEL_OK")
</pallas_src>

<mosaic_0001>
module attributes {stable_mosaic.version = 11 : i64} {
  func.func @gemm_stats_kernel(%arg0: i32, %arg1: memref<48x64xbf16, #tpu.memory_space<vmem>>, %arg2: memref<64x128xbf16, #tpu.memory_space<vmem>>, %arg3: memref<48x128xbf16, #tpu.memory_space<vmem>>, %arg4: memref<8x128xf32, #tpu.memory_space<vmem>>, %arg5: memref<8x128xf32, #tpu.memory_space<vmem>>) attributes {dimension_semantics = [#tpu.dimension_semantics<parallel>], iteration_bounds = array<i64: 3>, scalar_prefetch = 0 : i64, scratch_operands = 0 : i64, tpu.core_type = #tpu.core_type<tc>, window_params = [{transform_indices = @transform_0, window_bounds = array<i64: 48, 64>}, {pipeline_mode = #tpu.pipeline_mode<synchronous>, transform_indices = @transform_1, window_bounds = array<i64: 64, 128>}, {transform_indices = @transform_2, window_bounds = array<i64: 48, 128>}, {transform_indices = @transform_3, window_bounds = array<i64: 8, 128>}, {transform_indices = @transform_4, window_bounds = array<i64: 8, 128>}]} {
    %c0 = arith.constant 0 : index
    %c0_0 = arith.constant 0 : index
    %0 = vector.load %arg1[%c0, %c0_0] : memref<48x64xbf16, #tpu.memory_space<vmem>>, vector<48x64xbf16>
    %c0_1 = arith.constant 0 : index
    %c0_2 = arith.constant 0 : index
    %1 = vector.load %arg2[%c0_1, %c0_2] : memref<64x128xbf16, #tpu.memory_space<vmem>>, vector<64x128xbf16>
    %cst = arith.constant dense<0.000000e+00> : vector<48x128xf32>
    %2 = tpu.matmul %0, %1, %cst {dimension_numbers = #tpu.dot_dimension_numbers<[1], [0], [0], [1], [0, 0, 1, 1], [], []>} : vector<48x64xbf16>, vector<64x128xbf16>, vector<48x128xf32> -> vector<48x128xf32>
    %3 = arith.truncf %2 : vector<48x128xf32> to vector<48x128xbf16>
    %c0_3 = arith.constant 0 : index
    %c0_4 = arith.constant 0 : index
    %4 = vector.load %arg3[%c0_3, %c0_4] : memref<48x128xbf16, #tpu.memory_space<vmem>>, vector<48x128xbf16>
    tpu.vector_store %arg3[%c0_3, %c0_4], %3 {strides = array<i32>} : memref<48x128xbf16, #tpu.memory_space<vmem>>, vector<48x128xbf16>,
    %cst_5 = arith.constant 1.000000e+00 : f32
    %5 = vector.broadcast %cst_5 : f32 to vector<8x48xf32>
    %cst_6 = arith.constant dense<0.000000e+00> : vector<8x128xf32>
    %6 = tpu.matmul %5, %2, %cst_6 {dimension_numbers = #tpu.dot_dimension_numbers<[1], [0], [0], [1], [0, 0, 1, 1], [], []>} : vector<8x48xf32>, vector<48x128xf32>, vector<8x128xf32> -> vector<8x128xf32>
    %c0_7 = arith.constant 0 : index
    %c0_8 = arith.constant 0 : index
    %7 = vector.load %arg4[%c0_7, %c0_8] : memref<8x128xf32, #tpu.memory_space<vmem>>, vector<8x128xf32>
    tpu.vector_store %arg4[%c0_7, %c0_8], %6 {strides = array<i32>} : memref<8x128xf32, #tpu.memory_space<vmem>>, vector<8x128xf32>,
    %8 = arith.mulf %2, %2 : vector<48x128xf32>
    %cst_9 = arith.constant dense<0.000000e+00> : vector<8x128xf32>
    %9 = tpu.matmul %5, %8, %cst_9 {dimension_numbers = #tpu.dot_dimension_numbers<[1], [0], [0], [1], [0, 0, 1, 1], [], []>} : vector<8x48xf32>, vector<48x128xf32>, vector<8x128xf32> -> vector<8x128xf32>
    %c0_10 = arith.constant 0 : index
    %c0_11 = arith.constant 0 : index
    %10 = vector.load %arg5[%c0_10, %c0_11] : memref<8x128xf32, #tpu.memory_space<vmem>>, vector<8x128xf32>
    tpu.vector_store %arg5[%c0_10, %c0_11], %9 {strides = array<i32>} : memref<8x128xf32, #tpu.memory_space<vmem>>, vector<8x128xf32>,
    return
  }
  func.func @transform_0(%arg0: i32) -> (i32, i32) {
    %c0_i32 = arith.constant 0 : i32
    %c0_i32_0 = arith.constant 0 : i32
    return %arg0, %c0_i32 : i32, i32
  }
  func.func @transform_1(%arg0: i32) -> (i32, i32) {
    %c0_i32 = arith.constant 0 : i32
    %c0_i32_0 = arith.constant 0 : i32
    %c0_i32_1 = arith.constant 0 : i32
    return %c0_i32, %c0_i32_0 : i32, i32
  }
  func.func @transform_2(%arg0: i32) -> (i32, i32) {
    %c0_i32 = arith.constant 0 : i32
    %c0_i32_0 = arith.constant 0 : i32
    return %arg0, %c0_i32 : i32, i32
  }
  func.func @transform_3(%arg0: i32) -> (i32, i32) {
    %c0_i32 = arith.constant 0 : i32
    %c0_i32_0 = arith.constant 0 : i32
    return %arg0, %c0_i32 : i32, i32
  }
  func.func @transform_4(%arg0: i32) -> (i32, i32) {
    %c0_i32 = arith.constant 0 : i32
    %c0_i32_0 = arith.constant 0 : i32
    return %arg0, %c0_i32 : i32, i32
  }
}

module attributes {stable_mosaic.version = 11 : i64} {
  func.func @bn_lrelu_kernel(%arg0: i32, %arg1: memref<48x128xbf16, #tpu.memory_space<vmem>>, %arg2: memref<1x128xf32, #tpu.memory_space<vmem>>, %arg3: memref<1x128xf32, #tpu.memory_space<vmem>>, %arg4: memref<48x128xf32, #tpu.memory_space<vmem>>) attributes {dimension_semantics = [#tpu.dimension_semantics<parallel>], iteration_bounds = array<i64: 3>, scalar_prefetch = 0 : i64, scratch_operands = 0 : i64, tpu.core_type = #tpu.core_type<tc>, window_params = [{transform_indices = @transform_0, window_bounds = array<i64: 48, 128>}, {pipeline_mode = #tpu.pipeline_mode<synchronous>, transform_indices = @transform_1, window_bounds = array<i64: 1, 128>}, {pipeline_mode = #tpu.pipeline_mode<synchronous>, transform_indices = @transform_2, window_bounds = array<i64: 1, 128>}, {transform_indices = @transform_3, window_bounds = array<i64: 48, 128>}]} {
    %c0 = arith.constant 0 : index
    %c0_0 = arith.constant 0 : index
    %0 = vector.load %arg1[%c0, %c0_0] : memref<48x128xbf16, #tpu.memory_space<vmem>>, vector<48x128xbf16>
    %1 = arith.extf %0 : vector<48x128xbf16> to vector<48x128xf32>
    %c0_1 = arith.constant 0 : index
    %c0_2 = arith.constant 0 : index
    %2 = vector.load %arg2[%c0_1, %c0_2] : memref<1x128xf32, #tpu.memory_space<vmem>>, vector<1x128xf32>
    %3 = vector.broadcast %2 : vector<1x128xf32> to vector<48x128xf32>
    %4 = arith.mulf %1, %3 : vector<48x128xf32>
    %c0_3 = arith.constant 0 : index
    %c0_4 = arith.constant 0 : index
    %5 = vector.load %arg3[%c0_3, %c0_4] : memref<1x128xf32, #tpu.memory_space<vmem>>, vector<1x128xf32>
    %6 = vector.broadcast %5 : vector<1x128xf32> to vector<48x128xf32>
    %7 = arith.addf %4, %6 : vector<48x128xf32>
    %cst = arith.constant 2.000000e-01 : f32
    %8 = vector.broadcast %cst : f32 to vector<48x128xf32>
    %9 = arith.mulf %8, %7 : vector<48x128xf32>
    %10 = arith.maximumf %7, %9 : vector<48x128xf32>
    %c0_5 = arith.constant 0 : index
    %c0_6 = arith.constant 0 : index
    %11 = vector.load %arg4[%c0_5, %c0_6] : memref<48x128xf32, #tpu.memory_space<vmem>>, vector<48x128xf32>
    tpu.vector_store %arg4[%c0_5, %c0_6], %10 {strides = array<i32>} : memref<48x128xf32, #tpu.memory_space<vmem>>, vector<48x128xf32>,
    return
  }
  func.func @transform_0(%arg0: i32) -> (i32, i32) {
    %c0_i32 = arith.constant 0 : i32
    %c0_i32_0 = arith.constant 0 : i32
    return %arg0, %c0_i32 : i32, i32
  }
  func.func @transform_1(%arg0: i32) -> (i32, i32) {
    %c0_i32 = arith.constant 0 : i32
    %c0_i32_0 = arith.constant 0 : i32
    %c0_i32_1 = arith.constant 0 : i32
    return %c0_i32, %c0_i32_0 : i32, i32
  }
  func.func @transform_2(%arg0: i32) -> (i32, i32) {
    %c0_i32 = arith.constant 0 : i32
    %c0_i32_0 = arith.constant 0 : i32
    %c0_i32_1 = arith.constant 0 : i32
    return %c0_i32, %c0_i32_0 : i32, i32
  }
  func.func @transform_3(%arg0: i32) -> (i32, i32) {
    %c0_i32 = arith.constant 0 : i32
    %c0_i32_0 = arith.constant 0 : i32
    return %arg0, %c0_i32 : i32, i32
  }
}

</mosaic_0001>

<bundles_post_ra>
// kernel: conv_block.3
= control target key start
LH: loop header
LB: loop body
LE: loop exit
PB: predicated region body
PF: predicated region fallthrough
CT: control target
= control target key end

     0   :  { %s347_s12 = smov 0   ;;  %s374_s0 = inlined_call_operand.vmem [shape: bf16[144,128], index: 0, kind: input, shape index: {}]   ;;  %s375_s1 = inlined_call_operand.vmem [shape: f32[1,128], index: 1, kind: input, shape index: {}]   ;;  %s376_s2 = inlined_call_operand.vmem [shape: f32[1,128], index: 2, kind: input, shape index: {}]   ;;  %s377_s3 = inlined_call_operand.vmem [shape: f32[144,128], index: 3, kind: output, shape index: {}]  }
   0x1 LB: > { %s286_s13 = sadd.s32 4294967295, %s325_s12   ;;  %p290_p0 = scmp.ge.s32.totalorder %s325_s12, 1  ;;  %s325_s12 = sphi %s347_s12, %s13_s12  }
   0x2   : > { %p138_p1 = scmp.lt.s32.totalorder %s325_s12, 4 }
   0x4   : > { %p139_p2 = pnand %p290_p0, %p138_p1 }
   0x5   : > { %s162_s14 = smul.u32 (!%p139_p2), 6, %s286_s13  ;;  %v293_v0 = vld [vmem:[%s375_s1] ss:$0 sm:$0xff] (!%p139_p2) }
   0x6   : > { %142 = sbr.rel (%p139_p2) target bundleno = 30 (0x1e), region = 32  ;;  %v294_v8 = vld [vmem:[%s376_s2] ss:$0 sm:$0xff] (!%p139_p2) }
   0x7   : > { %p163_p3 = scmp.lt.s32.totalorder (!%p139_p2), %s162_s14, 17 }
   0xd   : > { %s379_s14 = smov (!%p163_p3, %s162_s14), 17 }
   0xe   : > { %s291_s15 = sshll.u32 %s379_s14, 2  ;;  %s292_s23 = sshll.u32 %s379_s14, 3 }
   0xf   : > { %s166_s18 = scalar_lea.vmem %s374_s0, %s291_s15  ;;  %s172_s26 = scalar_lea.vmem %s377_s3, %s292_s23 }
  0x10   : > { %v298_v1 = vld [vmem:[%s166_s18] sm:$0xff]   ;;  %v309_v2 = vld [vmem:[%s166_s18 + $0x8] sm:$0xff]   ;;  %v310_v3 = vld [vmem:[%s166_s18 + $0x10] sm:$0xff]  }
  0x11   : > { %v299_v4 = vunpack.c.l.bf16 %v298_v1  ;;  %v300_v5 = vunpack.c.h.bf16 %v298_v1  ;;  %v303_v6 = vunpack.c.l.bf16 %v309_v2  ;;  %v304_v7 = vunpack.c.h.bf16 %v309_v2 }
  0x12   : > { %v307_v9 = vunpack.c.l.bf16 %v310_v3  ;;  %v308_v10 = vunpack.c.h.bf16 %v310_v3 }
  0x13   : > { %v193_v11 = vmul.f32 %v299_v4, %v293_v0  ;;  %v194_v12 = vmul.f32 %v300_v5, %v293_v0  ;;  %v195_v13 = vmul.f32 %v303_v6, %v293_v0  ;;  %v196_v14 = vmul.f32 %v304_v7, %v293_v0 }
  0x14   : > { %v197_v15 = vmul.f32 %v307_v9, %v293_v0  ;;  %v198_v16 = vmul.f32 %v308_v10, %v293_v0 }
  0x15   : > { %v206_v17 = vadd.f32 %v294_v8, %v193_v11  ;;  %v207_v18 = vadd.f32 %v294_v8, %v194_v12  ;;  %v208_v19 = vadd.f32 %v294_v8, %v195_v13  ;;  %v209_v20 = vadd.f32 %v294_v8, %v196_v14 }
  0x16   : > { %v210_v21 = vadd.f32 %v294_v8, %v197_v15  ;;  %v211_v22 = vadd.f32 %v294_v8, %v198_v16 }
  0x17   : > { %v212_v23 = vmul.f32 0.2, %v206_v17  ;;  %v213_v24 = vmul.f32 0.2, %v207_v18  ;;  %v214_v25 = vmul.f32 0.2, %v208_v19 }
  0x18   : > { %v215_v26 = vmul.f32 0.2, %v209_v20  ;;  %v216_v27 = vmul.f32 0.2, %v210_v21  ;;  %v217_v28 = vmul.f32 0.2, %v211_v22 }
  0x19   : > { %v218_v29 = vmax.f32 %v206_v17, %v212_v23  ;;  %v219_v30 = vmax.f32 %v207_v18, %v213_v24  ;;  %v220_v31 = vmax.f32 %v208_v19, %v214_v25 }
  0x1a   : > { %v221_v32 = vmax.f32 %v209_v20, %v215_v26  ;;  %v222_v33 = vmax.f32 %v210_v21, %v216_v27  ;;  %v223_v34 = vmax.f32 %v211_v22, %v217_v28 }
  0x1b   : > { %224 = vst [vmem:[%s172_s26] sm:$0xff] %v218_v29  ;;  %225 = vst [vmem:[%s172_s26 + $0x8] sm:$0xff] %v219_v30 }
  0x1c   : > { %226 = vst [vmem:[%s172_s26 + $0x10] sm:$0xff] %v220_v31  ;;  %227 = vst [vmem:[%s172_s26 + $0x18] sm:$0xff] %v221_v32 }
  0x1d   : > { %228 = vst [vmem:[%s172_s26 + $0x20] sm:$0xff] %v222_v33  ;;  %229 = vst [vmem:[%s172_s26 + $0x28] sm:$0xff] %v223_v34 }
  0x1e PF: > { %s13_s12 = sadd.s32 1, %s325_s12  }
  0x1f   : > { %p10_p4 = scmp.ge.s32.totalorder %s13_s12, 5  }
  0x21   :  { %12 = sbr.rel (!%p10_p4) target bundleno = 1 (0x1), region = 62 }

// kernel: conv_block.2
= control target key start
LH: loop header
LB: loop body
LE: loop exit
PB: predicated region body
PF: predicated region fallthrough
CT: control target
= control target key end

     0   :  { %s840_s15 = smov 0   ;;  %s894_s0 = inlined_call_operand.vmem [shape: bf16[144,64], index: 0, kind: input, shape index: {}]   ;;  %s895_s1 = inlined_call_operand.vmem [shape: bf16[64,128], index: 1, kind: input, shape index: {}]   ;;  %s896_s2 = inlined_call_operand.vmem [shape: bf16[144,128], index: 2, kind: output, shape index: {0}]   ;;  %s897_s3 = inlined_call_operand.vmem [shape: f32[24,128], index: 3, kind: output, shape index: {1}]   ;;  %s898_s4 = inlined_call_operand.vmem [shape: f32[24,128], index: 4, kind: output, shape index: {2}]  }
   0x1 LB: > { %s846_s16 = sadd.s32 4294967295, %s809_s15   ;;  %p647_p0 = scmp.ge.s32.totalorder %s809_s15, 1  ;;  %s809_s15 = sphi %s840_s15, %s15_s15  }
   0x2   : > { %p168_p1 = scmp.lt.s32.totalorder %s809_s15, 4 }
   0x4   : > { %p169_p2 = pnand %p647_p0, %p168_p1 }
   0x5   : > { %v796_v0 = vld [vmem:[%s895_s1] sm:$0xff] (!%p169_p2)   ;;  %v811_v1 = vmov (!%p169_p2), 0.0   ;;  %v797_v2 = vld [vmem:[%s895_s1 + $0x8] sm:$0xff] (!%p169_p2)   ;;  %vm812_vm0 = vmmov (!%p169_p2), 0   ;;  %s202_s21 = smul.u32 (!%p169_p2), 6, %s846_s16  ;;  %v798_v3 = vld [vmem:[%s895_s1 + $0x10] sm:$0xff] (!%p169_p2)  }
   0x6   : > { %172 = sbr.rel (%p169_p2) target bundleno = 482 (0x1e2), region = 28  ;;  %716 = vmatprep.subr.bf16.mxu0 (!%p169_p2), %v811_v1  ;;  %724 = vmatprep.mubr.msk.bf16.mxu0 (!%p169_p2), %vm812_vm0, %v811_v1  ;;  %v799_v4 = vld [vmem:[%s895_s1 + $0x18] sm:$0xff] (!%p169_p2)   ;;  %vm276_vm1 = vcmask (!%p169_p2), 523264   ;;  %v813_v8 = vmov (!%p169_p2), 0.0|0.0   ;;  %vm373_vm2 = vcmask (!%p169_p2), 392192   ;;  %v814_v33 = vmov (!%p169_p2), 1.0  }
   0x7   : > { %717 = vmatpush3.bf16.msra.mxu0 (!%p169_p2), %v796_v0  ;;  %748 = vmatprep.mubr.msk.f32.mxu1 (!%p169_p2), %vm812_vm0, %v811_v1  ;;  %p203_p3 = scmp.lt.s32.totalorder (!%p169_p2), %s202_s21, 17  ;;  %p214_p4 = scmp.lt.s32.totalorder (!%p169_p2), %s846_s16, 2 }
   0x8   : > { %718 = vmatprep.subr.bf16.mxu0 (!%p169_p2), %v811_v1  ;;  %766 = vmatprep.subr.bf16.mxu1 (!%p169_p2), %v813_v8 }
   0xb   : > { %719 = vmatpush3.bf16.msra.mxu0 (!%p169_p2), %v797_v2 }
   0xc   : > { %720 = vmatprep.subr.bf16.mxu0 (!%p169_p2), %v811_v1 }
   0xd   : > { %s900_s21 = smov (!%p203_p3, %s202_s21), 17  ;;  %s902_s16 = smov (!%p214_p4, %s846_s16), 2 }
   0xe   : > { %s648_s24 = sshll.u32 %s900_s21, 2  ;;  %s650_s7 = sshll.u32 %s902_s16, 3 }
   0xf   : > { %s206_s27 = scalar_lea.vmem %s894_s0, %s648_s24  ;;  %721 = vmatpush3.bf16.msra.mxu0 %v798_v3  ;;  %s212_s6 = scalar_lea.vmem %s896_s2, %s648_s24 }
  0x10   : > { %722 = vmatprep.subr.bf16.mxu0 %v811_v1  ;;  %v800_v5 = vld [vmem:[%s206_s27] sm:$0xff]   ;;  %v801_v6 = vld [vmem:[%s206_s27 + $0x8] sm:$0xff]   ;;  %v802_v7 = vld [vmem:[%s206_s27 + $0x10] sm:$0xff]   ;;  %s217_s10 = scalar_lea.vmem %s897_s3, %s650_s7  ;;  %s221_s13 = scalar_lea.vmem %s898_s4, %s650_s7 }
  0x13   : > { %723 = vmatpush3.bf16.msra.mxu0 %v799_v4 }
  0x16   : > { %725 = vmatmul.mubr.msk.bf16.vlgmr.msra.gmra.mrb[0].mxu0 %vm276_vm1, %v800_v5 }
  0x17   : > { %728 = vmatprep.mubr.msk.bf16.mxu0 %vm812_vm0, %v811_v1 }
  0x1e   : > { %729 = vmatmul.mubr.msk.bf16.gmra.mrb[4].mxu0 %vm276_vm1, %v801_v6 }
  0x1f   : > { %732 = vmatprep.mubr.msk.bf16.mxu0 %vm812_vm0, %v811_v1 }
  0x26   : > { %733 = vmatmul.mubr.msk.bf16.gmra.mrb[8].mxu0 %vm276_vm1, %v802_v7 }
  0xe9   : > { %v320_v9 = vpop.f32.mrb[0].mxu0 }
  0xea   : > { %v726_v10 = vpop.f32.mrb[1].mxu0  ;;  %v448_v12 = vmul.f32 %v320_v9, %v320_v9 }
  0xeb   : > { %v323_v11 = vpop.f32.mrb[2].mxu0 }
  0xec   : > { %v449_v13 = vmul.f32 %v323_v11, %v323_v11  ;;  %v727_v14 = vpop.f32.mrb[3].mxu0  ;;  %v681_v15 = vpack.c.bf16 %v323_v11, %v320_v9 }
  0xee   : > { %v776_v16 = vpack.c.bf16 %v449_v13, %v448_v12  ;;  %682 = vst [vmem:[%s212_s6] sm:$0xff] %v681_v15   ;;  %768 = vmatpush3.bf16.msra.mxu1 %v681_v15 }
  0xef   : > { %769 = vmatprep.subr.bf16.mxu1 %v813_v8 }
  0xf1   : > { %v328_v17 = vpop.f32.mrb[4].mxu0 }
  0xf2   : > { %v730_v18 = vpop.f32.mrb[5].mxu0  ;;  %v450_v20 = vmul.f32 %v328_v17, %v328_v17 }
  0xf3   : > { %v331_v19 = vpop.f32.mrb[6].mxu0 }
  0xf4   : > { %v686_v21 = vpack.c.bf16 %v331_v19, %v328_v17  ;;  %v451_v22 = vmul.f32 %v331_v19, %v331_v19  ;;  %v731_v23 = vpop.f32.mrb[7].mxu0 }
  0xf6   : > { %693 = vst [vmem:[%s212_s6 + $0x8] sm:$0xff] %v686_v21   ;;  %v779_v24 = vpack.c.bf16 %v451_v22, %v450_v20  ;;  %771 = vmatpush3.bf16.msra.mxu1 %v686_v21 }
  0xf7   : > { %772 = vmatprep.subr.bf16.mxu1 %v813_v8 }
  0xf9   : > { %v336_v25 = vpop.f32.mrb[8].mxu0 }
  0xfa   : > { %v734_v26 = vpop.f32.mrb[9].mxu0  ;;  %v452_v28 = vmul.f32 %v336_v25, %v336_v25 }
  0xfb   : > { %v339_v27 = vpop.f32.mrb[10].mxu0 }
  0xfc   : > { %v691_v29 = vpack.c.bf16 %v339_v27, %v336_v25  ;;  %v453_v30 = vmul.f32 %v339_v27, %v339_v27  ;;  %v735_v31 = vpop.f32.mrb[11].mxu0 }
  0xfe   : > { %694 = vst [vmem:[%s212_s6 + $0x10] sm:$0xff] %v691_v29   ;;  %v782_v32 = vpack.c.bf16 %v453_v30, %v452_v28  ;;  %774 = vmatpush3.bf16.msra.mxu1 %v691_v29 }
  0xff   : > { %775 = vmatprep.subr.bf16.mxu1 %v813_v8 }
 0x101   : > { %749 = vmatmul.mubr.msk.f32.vlgmr.msra.gmra.mrb[0].mxu1 %vm373_vm2, %v814_v33 }
 0x102   : > { %777 = vmatpush3.bf16.msra.mxu1 %v776_v16  ;;  %763 = vmatprep.mubr.msk.f32.mxu1 %vm812_vm0, %v811_v1 }
 0x103   : > { %778 = vmatprep.subr.bf16.mxu1 %v813_v8 }
 0x106   : > { %780 = vmatpush3.bf16.msra.mxu1 %v779_v24 }
 0x107   : > { %781 = vmatprep.subr.bf16.mxu1 %v813_v8 }
 0x10a   : > { %783 = vmatpush3.bf16.msra.mxu1 %v782_v32 }
 0x10d   : > { %764 = vmatmul.mubr.msk.f32.vlgmr.msra.gmra.mrb[2].mxu1 %vm373_vm2, %v814_v33 }
 0x1d4   : > { %v443_v34 = vpop.f32.mrb[0].mxu1 }
 0x1d5   : > { %447 = vst [vmem:[%s217_s10] sm:$0xff] %v443_v34  ;;  %v750_v35 = vpop.f32.mrb[1].mxu1 }
 0x1e0   : > { %v520_v36 = vpop.f32.mrb[2].mxu1 }
 0x1e1   : > { %524 = vst [vmem:[%s221_s13] sm:$0xff] %v520_v36  ;;  %v765_v37 = vpop.f32.mrb[3].mxu1 }
 0x1e2 PF: > { %s15_s15 = sadd.s32 1, %s809_s15  }
 0x1e3   : > { %p12_p5 = scmp.ge.s32.totalorder %s15_s15, 5  }
 0x1e5   :  { %14 = sbr.rel (!%p12_p5) target bundleno = 1 (0x1), region = 82 }

</bundles_post_ra>
